<compile_context>
chip_gen: v7x
topology: tpu7x:2x2x1
jax: 0.10.0
libtpu: 0.0.40
codegen_flags: <defaults>
</compile_context>

<pallas_src>
import functools

import jax
import jax.numpy as jnp
from jax.experimental import pallas as pl
from jax.experimental.pallas import tpu as pltpu


def _round_up(x, m):
    return (x + m - 1) // m * m


def _attention_gated_kernel(x_ref, wab_ref, bab_ref, wf_ref, bf_ref, out_ref,
                            *, n_latent, n_classes, h_pad):
    # Fused gating GEMM: one MXU pass produces both branches packed along lanes.
    x = x_ref[...]
    h = jnp.dot(x, wab_ref[...], preferred_element_type=jnp.float32)
    h = h + bab_ref[...]                                    # (TM, H_pad) f32

    # Single EUP tanh pass; sigmoid branch recovered as 0.5*tanh(z/2) + 0.5
    # (the 0.5 input pre-scale was folded into the packed Wb / bb columns).
    lane = jax.lax.broadcasted_iota(jnp.int32, h.shape, 1)
    is_a = lane < n_latent
    t = jnp.tanh(h)
    act = jnp.where(is_a, t, 0.5 * t + 0.5)                 # tanh(a) | sigmoid(b) | junk

    # Align the b half onto the a half (XLU rotate; equivalent to a left shift
    # by n_latent lanes), then gate.  Only lanes [0, n_latent) are meaningful.
    b_aligned = pltpu.roll(act, h_pad - n_latent, 1)
    gated = act * b_aligned

    # Final fc.  Padded Wfc rows >= n_latent are zero, killing the junk lanes.
    res = jnp.dot(gated.astype(wf_ref.dtype), wf_ref[...],
                  preferred_element_type=jnp.float32) + bf_ref[...]
    # Store only the real classes: narrow (TM, n_classes) writeback.
    out_ref[...] = res[:, :n_classes].astype(out_ref.dtype)


def attention_gated_forward(x, wa, ba, wb, bb, wf, bf, *, tile_m=None,
                            gemm_dtype=jnp.float32):
    """Returns (A, x) matching AttentionGated.forward (dropout=False).

    Weights are stored pre-transposed as [in, out]; biases are 1-D or (1, out).
    Handles arbitrary N (rows are zero-padded to the tile size and sliced off).
    """
    x = jnp.asarray(x, jnp.float32)
    N, n_input = x.shape
    n_latent = wa.shape[1]
    n_classes = wf.shape[1]

    # --- pack both gating branches into one lane block -----------------------
    H_pad = _round_up(2 * n_latent, 128)
    C_pad = _round_up(n_classes, 128)

    # b columns pre-scaled by 0.5 so sigmoid(z) = 0.5*tanh(0.5*z) + 0.5 reuses
    # the kernel's single tanh pass.
    w_ab = jnp.zeros((n_input, H_pad), jnp.float32)
    w_ab = w_ab.at[:, :n_latent].set(jnp.asarray(wa, jnp.float32))
    w_ab = w_ab.at[:, n_latent:2 * n_latent].set(
        0.5 * jnp.asarray(wb, jnp.float32))

    b_ab = jnp.zeros((1, H_pad), jnp.float32)
    b_ab = b_ab.at[:, :n_latent].set(jnp.reshape(ba, (1, n_latent)))
    b_ab = b_ab.at[:, n_latent:2 * n_latent].set(
        0.5 * jnp.reshape(bb, (1, n_latent)))

    wf_p = jnp.zeros((H_pad, C_pad), jnp.float32).at[:n_latent, :n_classes].set(wf)
    bf_p = jnp.zeros((1, C_pad), jnp.float32).at[:, :n_classes].set(
        jnp.reshape(bf, (1, n_classes)))

    # --- row tiling -----------------------------------------------------------
    if tile_m is None:
        cap = 1024            # ~1 MiB of per-step intermediates: far under VMEM
        if N >= 256:
            # Force >= 2 grid steps so v7x's two TensorCores both get work.
            tile_m = min(cap, _round_up(-(-N // 2), 8))
        else:
            tile_m = min(cap, _round_up(max(N, 1), 8))
    tile_m = max(8, _round_up(tile_m, 8))
    N_pad = _round_up(N, tile_m)
    x_p = x if N_pad == N else jnp.pad(x, ((0, N_pad - N), (0, 0)))

    # Optional bf16 MXU inputs (v6e/v7x): halves x HBM read + weight VMEM.
    x_p = x_p.astype(gemm_dtype)
    w_ab = w_ab.astype(gemm_dtype)
    wf_p = wf_p.astype(gemm_dtype)

    grid = (N_pad // tile_m,)
    resident = lambda shape: pl.BlockSpec(shape, lambda i: (0, 0))

    A_pad = pl.pallas_call(
        functools.partial(_attention_gated_kernel, n_latent=n_latent,
                          n_classes=n_classes, h_pad=H_pad),
        out_shape=jax.ShapeDtypeStruct((N_pad, n_classes), jnp.float32),
        grid_spec=pltpu.PrefetchScalarGridSpec(
            num_scalar_prefetch=0,
            grid=grid,
            in_specs=[
                pl.BlockSpec((tile_m, n_input), lambda i: (i, 0)),  # x tile
                resident((n_input, H_pad)),                          # packed W_ab
                resident((1, H_pad)),                                # packed b_ab
                resident((H_pad, C_pad)),                            # padded Wfc
                resident((1, C_pad)),                                # padded bfc
            ],
            out_specs=pl.BlockSpec((tile_m, n_classes), lambda i: (i, 0)),
        ),
        compiler_params=pltpu.CompilerParams(
            dimension_semantics=("parallel",),
        ),
    )(x_p, w_ab, b_ab, wf_p, bf_p)

    A = A_pad if N_pad == N else A_pad[:N]
    return A, x


def init_params(key, n_input, n_latent, n_classes):
    """Deterministic synthetic parameters (PyTorch Linear init, stored as [in, out])."""
    k = jax.random.split(key, 6)
    scale_a = 1.0 / jnp.sqrt(n_input)
    scale_f = 1.0 / jnp.sqrt(n_latent)
    wa = jax.random.uniform(k[0], (n_input, n_latent), jnp.float32, -scale_a, scale_a)
    ba = jax.random.uniform(k[1], (1, n_latent), jnp.float32, -scale_a, scale_a)
    wb = jax.random.uniform(k[2], (n_input, n_latent), jnp.float32, -scale_a, scale_a)
    bb = jax.random.uniform(k[3], (1, n_latent), jnp.float32, -scale_a, scale_a)
    wf = jax.random.uniform(k[4], (n_latent, n_classes), jnp.float32, -scale_f, scale_f)
    bf = jax.random.uniform(k[5], (1, n_classes), jnp.float32, -scale_f, scale_f)
    return wa, ba, wb, bb, wf, bf


def reference_forward(x, wa, ba, wb, bb, wf, bf):
    a = jnp.tanh(x @ wa + ba)
    b = jax.nn.sigmoid(x @ wb + bb)
    return (a * b) @ wf + bf


if __name__ == "__main__":
    # TODO(synk): dropout branch of the module (dropout=True) is not modeled;
    # this implements the default inference path (dropout=False).
    N, n_input, n_latent, n_classes = 50, 32, 32, 2   # ragged N exercises row padding

    key = jax.random.PRNGKey(0)
    kx, kp = jax.random.split(key)
    x = jax.random.normal(kx, (N, n_input), jnp.float32)
    params = init_params(kp, n_input, n_latent, n_classes)
    A_ref = reference_forward(x, *params)

    # Default auto tile (single grid step at this N).
    A, x_out = attention_gated_forward(x, *params)
    A = jax.block_until_ready(A)
    x_out = jax.block_until_ready(x_out)
    assert A.shape == (N, n_classes)
    assert x_out.shape == x.shape
    assert jnp.allclose(A, A_ref, atol=1e-5, rtol=1e-5)
    assert jnp.array_equal(x_out, x)

    # Forced smaller tile: multi-step grid + tail-row padding path.
    A2, _ = attention_gated_forward(x, *params, tile_m=16)
    A2 = jax.block_until_ready(A2)
    assert jnp.allclose(A2, A_ref, atol=1e-5, rtol=1e-5)

    # Packed-lane layout + roll correctness across latent widths (incl. H_pad=256).
    for nl in (32, 64, 96):
        p_nl = init_params(jax.random.PRNGKey(nl), n_input, nl, n_classes)
        A_nl, _ = attention_gated_forward(x, *p_nl)
        A_nl = jax.block_until_ready(A_nl)
        assert jnp.allclose(A_nl, reference_forward(x, *p_nl), atol=1e-5, rtol=1e-5)

    # bf16 MXU-input path (v6e/v7x lever); looser tolerance vs f32 reference.
    A_bf16, _ = attention_gated_forward(x, *params, gemm_dtype=jnp.bfloat16)
    A_bf16 = jax.block_until_ready(A_bf16)
    assert jnp.allclose(A_bf16, A_ref, atol=5e-2, rtol=5e-2)

    print("KERNEL_OK")
</pallas_src>

<mosaic_0001>
module attributes {stable_mosaic.version = 11 : i64} {
  func.func @_attention_gated_kernel(%arg0: i32, %arg1: memref<56x32xf32, #tpu.memory_space<vmem>>, %arg2: memref<32x128xf32, #tpu.memory_space<vmem>>, %arg3: memref<1x128xf32, #tpu.memory_space<vmem>>, %arg4: memref<128x128xf32, #tpu.memory_space<vmem>>, %arg5: memref<1x128xf32, #tpu.memory_space<vmem>>, %arg6: memref<56x2xf32, #tpu.memory_space<vmem>>) attributes {dimension_semantics = [#tpu.dimension_semantics<parallel>], iteration_bounds = array<i64: 1>, scalar_prefetch = 0 : i64, scratch_operands = 0 : i64, tpu.core_type = #tpu.core_type<tc>, window_params = [{transform_indices = @transform_0, window_bounds = array<i64: 56, 32>}, {pipeline_mode = #tpu.pipeline_mode<synchronous>, transform_indices = @transform_1, window_bounds = array<i64: 32, 128>}, {pipeline_mode = #tpu.pipeline_mode<synchronous>, transform_indices = @transform_2, window_bounds = array<i64: 1, 128>}, {pipeline_mode = #tpu.pipeline_mode<synchronous>, transform_indices = @transform_3, window_bounds = array<i64: 128, 128>}, {pipeline_mode = #tpu.pipeline_mode<synchronous>, transform_indices = @transform_4, window_bounds = array<i64: 1, 128>}, {transform_indices = @transform_5, window_bounds = array<i64: 56, 2>}]} {
    %c0 = arith.constant 0 : index
    %c0_0 = arith.constant 0 : index
    %0 = vector.load %arg1[%c0, %c0_0] : memref<56x32xf32, #tpu.memory_space<vmem>>, vector<56x32xf32>
    %c0_1 = arith.constant 0 : index
    %c0_2 = arith.constant 0 : index
    %1 = vector.load %arg2[%c0_1, %c0_2] : memref<32x128xf32, #tpu.memory_space<vmem>>, vector<32x128xf32>
    %cst = arith.constant dense<0.000000e+00> : vector<56x128xf32>
    %2 = tpu.matmul %0, %1, %cst {dimension_numbers = #tpu.dot_dimension_numbers<[1], [0], [0], [1], [0, 0, 1, 1], [], []>} : vector<56x32xf32>, vector<32x128xf32>, vector<56x128xf32> -> vector<56x128xf32>
    %c0_3 = arith.constant 0 : index
    %c0_4 = arith.constant 0 : index
    %3 = vector.load %arg3[%c0_3, %c0_4] : memref<1x128xf32, #tpu.memory_space<vmem>>, vector<1x128xf32>
    %4 = vector.broadcast %3 : vector<1x128xf32> to vector<56x128xf32>
    %5 = arith.addf %2, %4 : vector<56x128xf32>
    %6 = tpu.iota {dimensions = array<i32: 1>} : vector<56x128xi32>
    %c32_i32 = arith.constant 32 : i32
    %7 = vector.broadcast %c32_i32 : i32 to vector<56x128xi32>
    %8 = arith.cmpi slt, %6, %7 : vector<56x128xi32>
    %9 = math.tanh %5 : vector<56x128xf32>
    %cst_5 = arith.constant 5.000000e-01 : f32
    %10 = vector.broadcast %cst_5 : f32 to vector<56x128xf32>
    %11 = arith.mulf %10, %9 : vector<56x128xf32>
    %cst_6 = arith.constant 5.000000e-01 : f32
    %12 = vector.broadcast %cst_6 : f32 to vector<56x128xf32>
    %13 = arith.addf %11, %12 : vector<56x128xf32>
    %14 = arith.select %8, %9, %13 : vector<56x128xi1>, vector<56x128xf32>
    %c96_i32 = arith.constant 96 : i32
    %15 = tpu.dynamic_rotate %14 by %c96_i32 dim 1 : vector<56x128xf32>, i32 -> vector<56x128xf32>
    %16 = arith.mulf %14, %15 : vector<56x128xf32>
    %c0_7 = arith.constant 0 : index
    %c0_8 = arith.constant 0 : index
    %17 = vector.load %arg4[%c0_7, %c0_8] : memref<128x128xf32, #tpu.memory_space<vmem>>, vector<128x128xf32>
    %cst_9 = arith.constant dense<0.000000e+00> : vector<56x128xf32>
    %18 = tpu.matmul %16, %17, %cst_9 {dimension_numbers = #tpu.dot_dimension_numbers<[1], [0], [0], [1], [0, 0, 1, 1], [], []>} : vector<56x128xf32>, vector<128x128xf32>, vector<56x128xf32> -> vector<56x128xf32>
    %c0_10 = arith.constant 0 : index
    %c0_11 = arith.constant 0 : index
    %19 = vector.load %arg5[%c0_10, %c0_11] : memref<1x128xf32, #tpu.memory_space<vmem>>, vector<1x128xf32>
    %20 = vector.broadcast %19 : vector<1x128xf32> to vector<56x128xf32>
    %21 = arith.addf %18, %20 : vector<56x128xf32>
    %22 = vector.extract_strided_slice %21 {offsets = [0, 0], sizes = [56, 2], strides = [1, 1]} : vector<56x128xf32> to vector<56x2xf32>
    %c0_12 = arith.constant 0 : index
    %c0_13 = arith.constant 0 : index
    %23 = vector.load %arg6[%c0_12, %c0_13] : memref<56x2xf32, #tpu.memory_space<vmem>>, vector<56x2xf32>
    tpu.vector_store %arg6[%c0_12, %c0_13], %22 {strides = array<i32>} : memref<56x2xf32, #tpu.memory_space<vmem>>, vector<56x2xf32>,
    return
  }
  func.func @transform_0(%arg0: i32) -> (i32, i32) {
    %c0_i32 = arith.constant 0 : i32
    %c0_i32_0 = arith.constant 0 : i32
    return %arg0, %c0_i32 : i32, i32
  }
  func.func @transform_1(%arg0: i32) -> (i32, i32) {
    %c0_i32 = arith.constant 0 : i32
    %c0_i32_0 = arith.constant 0 : i32
    %c0_i32_1 = arith.constant 0 : i32
    return %c0_i32, %c0_i32_0 : i32, i32
  }
  func.func @transform_2(%arg0: i32) -> (i32, i32) {
    %c0_i32 = arith.constant 0 : i32
    %c0_i32_0 = arith.constant 0 : i32
    %c0_i32_1 = arith.constant 0 : i32
    return %c0_i32, %c0_i32_0 : i32, i32
  }
  func.func @transform_3(%arg0: i32) -> (i32, i32) {
    %c0_i32 = arith.constant 0 : i32
    %c0_i32_0 = arith.constant 0 : i32
    %c0_i32_1 = arith.constant 0 : i32
    return %c0_i32, %c0_i32_0 : i32, i32
  }
  func.func @transform_4(%arg0: i32) -> (i32, i32) {
    %c0_i32 = arith.constant 0 : i32
    %c0_i32_0 = arith.constant 0 : i32
    %c0_i32_1 = arith.constant 0 : i32
    return %c0_i32, %c0_i32_0 : i32, i32
  }
  func.func @transform_5(%arg0: i32) -> (i32, i32) {
    %c0_i32 = arith.constant 0 : i32
    %c0_i32_0 = arith.constant 0 : i32
    return %arg0, %c0_i32 : i32, i32
  }
}

</mosaic_0001>

<bundles_post_ra>
// kernel: tpu_custom_call.1
= control target key start
LH: loop header
LB: loop body
LE: loop exit
PB: predicated region body
PF: predicated region fallthrough
CT: control target
= control target key end

     0   :  { %10 = vsyncpa [#allocation3], 0  ;;  %s578_s18 = smov [#allocation2]   ;;  %s754_s0 = inlined_call_operand.vmem [shape: f32[56,32], index: 0, kind: input, shape index: {}]   ;;  %s755_s1 = inlined_call_operand.vmem [shape: f32[32,128], index: 1, kind: input, shape index: {}]   ;;  %s756_s2 = inlined_call_operand.vmem [shape: f32[1,128], index: 2, kind: input, shape index: {}]   ;;  %s757_s3 = inlined_call_operand.hbm [shape: f32[128,128], index: 3, kind: input, shape index: {}]   ;;  %s758_s4 = inlined_call_operand.vmem [shape: f32[1,128], index: 4, kind: input, shape index: {}]   ;;  %s759_s5 = inlined_call_operand.vmem [shape: f32[56,2], index: 5, kind: output, shape index: {}]  }
   0x1   :  { %s22_s19 = sshll.u32 %s578_s18, 4  ;;  %s554_s22 = scalar_lea.hbm %s757_s3, 2048  ;;  %s23_s19 = int_to_ptr.vmem [resolvable:$true] %s22_s19 }
   0x2   :  { %p555_p0 = scmp.ne.s32.totalorder %s757_s3, %s554_s22  ;;  %p558_p1 = scmp.lt.u32.totalorder %s554_s22, %s757_s3 }
   0x4   :  { %p560_p2 = pnand %p558_p1, %p555_p0 }
   0x6   :  { %563 = shalt.err (!%p560_p2)
}
   0x7   :  { %s564_s27 = scalar_lea.vmem %s23_s19, 2048  ;;  %p569_p4 = scmp.lt.s32.totalorder %s23_s19, %s23_s19 }
   0x8   :  { %p565_p3 = scmp.ne.s32.totalorder %s23_s19, %s564_s27  ;;  %p570_p5 = scmp.lt.s32.totalorder %s564_s27, %s564_s27 }
   0xa   :  { %p571_p6 = por %p570_p5, %p569_p4 }
   0xc   :  { %p572_p7 = pnand %p571_p6, %p565_p3 }
   0xe   :  { %575 = shalt.err (!%p572_p7)
}
   0xf   :  { %s579_s28 = smov 128   ;;  %s580_s29 = smov 8  }
  0x10   :  { %28 = dma.hbm_to_vmem [thread:$0]  %s757_s3, 2048, %s23_s19, [#allocation3], %s579_s28, %s579_s28, %s580_s29  }
  0x11   :  { %576 = dma.done.wait [#allocation3], 2048  }
  0x12   :  { %577 = vsyncadd [#allocation3], 4294965248  ;;  %v581_v0 = vmov 0.0|0.0   ;;  %vm582_vm0 = vmmov 0   ;;  %v583_v1 = vmov 0.0   ;;  %v41_v2 = vld [vmem:[%s755_s1] sm:$0xff]  ;;  %v174_v55 = vlaneseq }
  0x13   :  { %487 = vmatprep.subr.bf16.mxu0 %v581_v0  ;;  %413 = vmatprep.mubr.msk.f32.mxu0 %vm582_vm0, %v583_v1  ;;  %v42_v3 = vld [vmem:[%s755_s1 + $0x8] sm:$0xff]  ;;  %v43_v4 = vld [vmem:[%s755_s1 + $0x10] sm:$0xff]  ;;  %v44_v6 = vld [vmem:[%s755_s1 + $0x18] sm:$0xff]  ;;  %vm52_vm1 = vcmask 261120   ;;  %vm349_vm3 = vcmask 15360  }
  0x14   :  { %517 = vmatprep.subr.bf16.mxu1 %v581_v0  ;;  %472 = vmatprep.mubr.msk.f32.mxu1 %vm582_vm0, %v583_v1  ;;  %v488_v5 = vpack.c.bf16 %v42_v3, %v41_v2  ;;  %v491_v7 = vpack.c.bf16 %v44_v6, %v43_v4  ;;  %v34_v8 = vld [vmem:[%s754_s0] sm:$0xff]  ;;  %v35_v9 = vld [vmem:[%s754_s0 + $0x8] sm:$0xff]  ;;  %v36_v10 = vld [vmem:[%s754_s0 + $0x10] sm:$0xff]  ;;  %v175_v60 = vand.u32 127, %v174_v55 }
  0x15   :  { %v37_v11 = vld [vmem:[%s754_s0 + $0x18] sm:$0xff]  ;;  %v38_v12 = vld [vmem:[%s754_s0 + $0x20] sm:$0xff]  ;;  %v39_v13 = vld [vmem:[%s754_s0 + $0x28] sm:$0xff] }
  0x16   :  { %489 = vmatpush3.bf16.msra.mxu0 %v488_v5  ;;  %v40_v14 = vld [vmem:[%s754_s0 + $0x30] sm:$0xff]  ;;  %v226_v15 = vld [vmem:[#allocation2] sm:$0xff]  ;;  %v227_v16 = vld [vmem:[#allocation2 + $0x8] sm:$0xff]  ;;  %vm176_vm2 = vcmp.lt.s32.totalorder %v175_v60, 32 }
  0x17   :  { %490 = vmatprep.subr.bf16.mxu0 %v581_v0  ;;  %v228_v17 = vld [vmem:[#allocation2 + $0x10] sm:$0xff]  ;;  %v494_v18 = vpack.c.bf16 %v227_v16, %v226_v15  ;;  %v229_v19 = vld [vmem:[#allocation2 + $0x18] sm:$0xff]  ;;  %v230_v21 = vld [vmem:[#allocation2 + $0x20] sm:$0xff] }
  0x18   :  { %v497_v20 = vpack.c.bf16 %v229_v19, %v228_v17  ;;  %v231_v22 = vld [vmem:[#allocation2 + $0x28] sm:$0xff]  ;;  %v232_v24 = vld [vmem:[#allocation2 + $0x30] sm:$0xff]  ;;  %v233_v25 = vld [vmem:[#allocation2 + $0x38] sm:$0xff] }
  0x19   :  { %525 = vmatpush3.bf16.msra.mxu1 %v494_v18  ;;  %v500_v23 = vpack.c.bf16 %v231_v22, %v230_v21  ;;  %v503_v26 = vpack.c.bf16 %v233_v25, %v232_v24  ;;  %v234_v27 = vld [vmem:[#allocation2 + $0x40] sm:$0xff]  ;;  %v235_v28 = vld [vmem:[#allocation2 + $0x48] sm:$0xff]  ;;  %v236_v30 = vld [vmem:[#allocation2 + $0x50] sm:$0xff] }
  0x1a   :  { %492 = vmatpush3.bf16.msra.mxu0 %v491_v7  ;;  %518 = vmatprep.subr.bf16.mxu1 %v581_v0  ;;  %v506_v29 = vpack.c.bf16 %v235_v28, %v234_v27  ;;  %v237_v31 = vld [vmem:[#allocation2 + $0x58] sm:$0xff]  ;;  %v238_v33 = vld [vmem:[#allocation2 + $0x60] sm:$0xff]  ;;  %v239_v34 = vld [vmem:[#allocation2 + $0x68] sm:$0xff] }
  0x1b   :  { %493 = vmatprep.subr.bf16.mxu0 %v581_v0  ;;  %v509_v32 = vpack.c.bf16 %v237_v31, %v236_v30  ;;  %v512_v35 = vpack.c.bf16 %v239_v34, %v238_v33  ;;  %v240_v36 = vld [vmem:[#allocation2 + $0x70] sm:$0xff]  ;;  %v241_v37 = vld [vmem:[#allocation2 + $0x78] sm:$0xff]  ;;  %v362_v43 = vld [vmem:[%s756_s2] ss:$0 sm:$0xff]  ;;  %s584_s2 = smov 96  }
  0x1c   :  { %v515_v38 = vpack.c.bf16 %v241_v37, %v240_v36 }
  0x1d   :  { %414 = vmatmul.mubr.msk.f32.vlgmr.msra.gmra.mrb[0].mxu0 %vm52_vm1, %v34_v8  ;;  %526 = vmatpush3.bf16.msra.mxu1 %v497_v20 }
  0x1e   :  { %416 = vmatprep.mubr.msk.f32.mxu0 %vm582_vm0, %v583_v1  ;;  %495 = vmatpush3.bf16.msra.mxu0 %v494_v18 }
  0x1f   :  { %496 = vmatprep.subr.bf16.mxu0 %v581_v0  ;;  %519 = vmatprep.subr.bf16.mxu1 %v581_v0 }
  0x21   :  { %417 = vmatmul.mubr.msk.f32.gmra.mrb[2].mxu0 %vm52_vm1, %v35_v9  ;;  %527 = vmatpush3.bf16.msra.mxu1 %v500_v23 }
  0x22   :  { %419 = vmatprep.mubr.msk.f32.mxu0 %vm582_vm0, %v583_v1  ;;  %498 = vmatpush3.bf16.msra.mxu0 %v497_v20 }
  0x23   :  { %499 = vmatprep.subr.bf16.mxu0 %v581_v0  ;;  %520 = vmatprep.subr.bf16.mxu1 %v581_v0 }
  0x25   :  { %420 = vmatmul.mubr.msk.f32.gmra.mrb[4].mxu0 %vm52_vm1, %v36_v10  ;;  %528 = vmatpush3.bf16.msra.mxu1 %v503_v26 }
  0x26   :  { %422 = vmatprep.mubr.msk.f32.mxu0 %vm582_vm0, %v583_v1  ;;  %501 = vmatpush3.bf16.msra.mxu0 %v500_v23 }
  0x27   :  { %502 = vmatprep.subr.bf16.mxu0 %v581_v0  ;;  %521 = vmatprep.subr.bf16.mxu1 %v581_v0 }
  0x29   :  { %423 = vmatmul.mubr.msk.f32.gmra.mrb[6].mxu0 %vm52_vm1, %v37_v11  ;;  %529 = vmatpush3.bf16.msra.mxu1 %v506_v29 }
  0x2a   :  { %425 = vmatprep.mubr.msk.f32.mxu0 %vm582_vm0, %v583_v1  ;;  %504 = vmatpush3.bf16.msra.mxu0 %v503_v26 }
  0x2b   :  { %505 = vmatprep.subr.bf16.mxu0 %v581_v0  ;;  %522 = vmatprep.subr.bf16.mxu1 %v581_v0 }
  0x2d   :  { %426 = vmatmul.mubr.msk.f32.gmra.mrb[8].mxu0 %vm52_vm1, %v38_v12  ;;  %530 = vmatpush3.bf16.msra.mxu1 %v509_v32 }
  0x2e   :  { %428 = vmatprep.mubr.msk.f32.mxu0 %vm582_vm0, %v583_v1  ;;  %507 = vmatpush3.bf16.msra.mxu0 %v506_v29 }
  0x2f   :  { %508 = vmatprep.subr.bf16.mxu0 %v581_v0  ;;  %523 = vmatprep.subr.bf16.mxu1 %v581_v0 }
  0x31   :  { %429 = vmatmul.mubr.msk.f32.gmra.mrb[10].mxu0 %vm52_vm1, %v39_v13  ;;  %531 = vmatpush3.bf16.msra.mxu1 %v512_v35 }
  0x32   :  { %431 = vmatprep.mubr.msk.f32.mxu0 %vm582_vm0, %v583_v1  ;;  %510 = vmatpush3.bf16.msra.mxu0 %v509_v32 }
  0x33   :  { %511 = vmatprep.subr.bf16.mxu0 %v581_v0  ;;  %524 = vmatprep.subr.bf16.mxu1 %v581_v0 }
  0x35   :  { %432 = vmatmul.mubr.msk.f32.gmra.mrb[12].mxu0 %vm52_vm1, %v40_v14  ;;  %532 = vmatpush3.bf16.msra.mxu1 %v515_v38 }
  0x36   :  { %466 = vmatprep.mubr.msk.f32.mxu0 %vm582_vm0, %v583_v1  ;;  %513 = vmatpush3.bf16.msra.mxu0 %v512_v35 }
  0x37   :  { %514 = vmatprep.subr.bf16.mxu0 %v581_v0 }
  0x3a   :  { %516 = vmatpush3.bf16.msra.mxu0 %v515_v38 }
  0xf0   :  { %v140_v39 = vpop.f32.mrb[0].mxu0 }
  0xf1   :  { %v415_v40 = vpop.f32.mrb[1].mxu0  ;;  %v141_v48 = vadd.f32 %v362_v43, %v140_v39 }
  0xf4   :  { %v145_v41 = vpop.f32.mrb[2].mxu0 }
  0xf5   :  { %v418_v42 = vpop.f32.mrb[3].mxu0  ;;  %v146_v52 = vadd.f32 %v362_v43, %v145_v41 }
  0xf6   :  { %v370_v42 = vld [vmem:[%s758_s4] ss:$0 sm:$0xff] }
  0xf8   :  { %v150_v44 = vpop.f32.mrb[4].mxu0 }
  0xf9   :  { %v151_v45 = vadd.f32 %v362_v43, %v150_v44  ;;  %v421_v46 = vpop.f32.mrb[5].mxu0 }
  0xfb   :  { %540 = vtanh.f32 %v151_v45 }
  0xfc   :  { %v155_v47 = vpop.f32.mrb[6].mxu0 }
  0xfd   :  { %v156_v49 = vadd.f32 %v362_v43, %v155_v47  ;;  %v424_v50 = vpop.f32.mrb[7].mxu0 }
  0xff   :  { %542 = vtanh.f32 %v156_v49 }
 0x100   :  { %v160_v51 = vpop.f32.mrb[8].mxu0  ;;  %544 = vtanh.f32 %v141_v48 }
 0x101   :  { %v161_v53 = vadd.f32 %v362_v43, %v160_v51  ;;  %v427_v54 = vpop.f32.mrb[9].mxu0 }
 0x103   :  { %546 = vtanh.f32 %v161_v53 }
 0x104   :  { %v165_v56 = vpop.f32.mrb[10].mxu0  ;;  %548 = vtanh.f32 %v146_v52 }
 0x105   :  { %v541_v57 = vpop.eup %540  ;;  %v166_v58 = vadd.f32 %v362_v43, %v165_v56  ;;  %v430_v59 = vpop.f32.mrb[11].mxu0 }
 0x106   :  { %v186_v61 = vmul.f32 0.5, %v541_v57 }
 0x107   :  { %550 = vtanh.f32 %v166_v58 }
 0x108   :  { %v170_v62 = vpop.f32.mrb[12].mxu0  ;;  %v193_v63 = vadd.f32 0.5, %v186_v61 }
 0x109   :  { %v543_v0 = vpop.eup %542  ;;  %v171_v2 = vadd.f32 %v362_v43, %v170_v62  ;;  %v433_v3 = vpop.f32.mrb[13].mxu0 }
 0x10a   :  { %v200_v4 = vsel %vm176_vm2, %v541_v57, %v193_v63  ;;  %v187_v5 = vmul.f32 0.5, %v543_v0  ;;  %v545_v6 = vpop.eup %544 }
 0x10b   :  { %552 = vtanh.f32 %v171_v2  ;;  %209 = vrot.lane.b32.xlu0 %v200_v4, %s584_s2  ;;  %v184_v11 = vmul.f32 0.5, %v545_v6 }
 0x10c   :  { %v194_v7 = vadd.f32 0.5, %v187_v5 }
 0x10d   :  { %v547_v8 = vpop.eup %546  ;;  %v191_v16 = vadd.f32 0.5, %v184_v11 }
 0x10e   :  { %v201_v9 = vsel %vm176_vm2, %v543_v0, %v194_v7  ;;  %v188_v10 = vmul.f32 0.5, %v547_v8  ;;  %v549_v12 = vpop.eup %548 }
 0x10f   :  { %211 = vrot.lane.b32.xlu0 %v201_v9, %s584_s2  ;;  %v185_v18 = vmul.f32 0.5, %v549_v12  ;;  %v198_v21 = vsel %vm176_vm2, %v545_v6, %v191_v16 }
 0x110   :  { %v195_v13 = vadd.f32 0.5, %v188_v10 }
 0x111   :  { %v551_v14 = vpop.eup %550  ;;  %v192_v23 = vadd.f32 0.5, %v185_v18 }
 0x112   :  { %v202_v15 = vsel %vm176_vm2, %v547_v8, %v195_v13  ;;  %v189_v17 = vmul.f32 0.5, %v551_v14 }
 0x113   :  { %213 = vrot.lane.b32.xlu1 %v202_v15, %s584_s2  ;;  %v199_v26 = vsel %vm176_vm2, %v549_v12, %v192_v23 }
 0x114   :  { %v196_v19 = vadd.f32 0.5, %v189_v17 }
 0x115   :  { %v553_v20 = vpop.eup %552 }
 0x116   :  { %v203_v22 = vsel %vm176_vm2, %v551_v14, %v196_v19  ;;  %v190_v24 = vmul.f32 0.5, %v553_v20 }
 0x117   :  { %205 = vrot.lane.b32.xlu1 %v198_v21, %s584_s2  ;;  %215 = vrot.lane.b32.xlu0 %v203_v22, %s584_s2 }
 0x118   :  { %v197_v25 = vadd.f32 0.5, %v190_v24 }
 0x11a   :  { %v204_v27 = vsel %vm176_vm2, %v553_v20, %v197_v25 }
 0x11b   :  { %207 = vrot.lane.b32.xlu1 %v199_v26, %s584_s2  ;;  %217 = vrot.lane.b32.xlu0 %v204_v27, %s584_s2 }
 0x17d   :  { %v210_v28 = vpop.permute.xlu0 %209 }
 0x17e   :  { %v221_v29 = vmul.f32 %v210_v28, %v200_v4 }
 0x180   :  { %473 = vmatmul.mubr.f32.vlgmr.msra.gmra.mrb[0].mxu1 %v221_v29 }
 0x181   :  { %v212_v30 = vpop.permute.xlu0 %211  ;;  %475 = vmatprep.mubr.msk.f32.mxu1 %vm582_vm0, %v583_v1 }
 0x182   :  { %v222_v31 = vmul.f32 %v212_v30, %v201_v9 }
 0x184   :  { %476 = vmatmul.mubr.f32.gmra.mrb[2].mxu1 %v222_v31 }
 0x185   :  { %v214_v32 = vpop.permute.xlu1 %213  ;;  %478 = vmatprep.mubr.msk.f32.mxu1 %vm582_vm0, %v583_v1 }
 0x186   :  { %v223_v33 = vmul.f32 %v214_v32, %v202_v15 }
 0x188   :  { %479 = vmatmul.mubr.f32.gmra.mrb[4].mxu1 %v223_v33 }
 0x189   :  { %v206_v34 = vpop.permute.xlu1 %205  ;;  %v216_v35 = vpop.permute.xlu0 %215  ;;  %481 = vmatprep.mubr.msk.f32.mxu1 %vm582_vm0, %v583_v1 }
 0x18a   :  { %v219_v36 = vmul.f32 %v206_v34, %v198_v21  ;;  %v224_v37 = vmul.f32 %v216_v35, %v203_v22 }
 0x18c   :  { %467 = vmatmul.mubr.f32.vlgmr.msra.gmra.mrb[14].mxu0 %v219_v36  ;;  %482 = vmatmul.mubr.f32.gmra.mrb[6].mxu1 %v224_v37 }
 0x18d   :  { %v208_v38 = vpop.permute.xlu1 %207  ;;  %v218_v39 = vpop.permute.xlu0 %217  ;;  %469 = vmatprep.mubr.msk.f32.mxu0 %vm582_vm0, %v583_v1  ;;  %484 = vmatprep.mubr.msk.f32.mxu1 %vm582_vm0, %v583_v1 }
 0x18e   :  { %v220_v40 = vmul.f32 %v208_v38, %v199_v26  ;;  %v225_v41 = vmul.f32 %v218_v39, %v204_v27 }
 0x190   :  { %470 = vmatmul.mubr.f32.gmra.mrb[16].mxu0 %v220_v40  ;;  %485 = vmatmul.mubr.f32.gmra.mrb[8].mxu1 %v225_v41 }
 0x253   :  { %v325_v43 = vpop.f32.mrb[0].mxu1 }
 0x254   :  { %v326_v44 = vadd.f32 %v370_v42, %v325_v43  ;;  %v474_v45 = vpop.f32.mrb[1].mxu1 }
 0x256   :  { %352 = vst.msk [vmem:[%s759_s5 + $0x10] sm:$0xff] %vm349_vm3, %v326_v44 }
 0x257   :  { %v330_v46 = vpop.f32.mrb[2].mxu1 }
 0x258   :  { %v331_v47 = vadd.f32 %v370_v42, %v330_v46  ;;  %v477_v1 = vpop.f32.mrb[3].mxu1 }
 0x25a   :  { %353 = vst.msk [vmem:[%s759_s5 + $0x18] sm:$0xff] %vm349_vm3, %v331_v47 }
 0x25b   :  { %v335_v48 = vpop.f32.mrb[4].mxu1 }
 0x25c   :  { %v336_v49 = vadd.f32 %v370_v42, %v335_v48  ;;  %v480_v50 = vpop.f32.mrb[5].mxu1 }
 0x25e   :  { %354 = vst.msk [vmem:[%s759_s5 + $0x20] sm:$0xff] %vm349_vm3, %v336_v49 }
 0x25f   :  { %v315_v51 = vpop.f32.mrb[14].mxu0  ;;  %v340_v52 = vpop.f32.mrb[6].mxu1 }
 0x260   :  { %v316_v53 = vadd.f32 %v370_v42, %v315_v51  ;;  %v341_v54 = vadd.f32 %v370_v42, %v340_v52  ;;  %v468_v55 = vpop.f32.mrb[15].mxu0  ;;  %v483_v56 = vpop.f32.mrb[7].mxu1 }
 0x262   :  { %350 = vst.msk [vmem:[%s759_s5] sm:$0xff] %vm349_vm3, %v316_v53  ;;  %355 = vst.msk [vmem:[%s759_s5 + $0x28] sm:$0xff] %vm349_vm3, %v341_v54 }
 0x263   :  { %v320_v57 = vpop.f32.mrb[16].mxu0  ;;  %v345_v58 = vpop.f32.mrb[8].mxu1 }
 0x264   :  { %v321_v59 = vadd.f32 %v370_v42, %v320_v57  ;;  %v346_v60 = vadd.f32 %v370_v42, %v345_v58  ;;  %v471_v61 = vpop.f32.mrb[17].mxu0  ;;  %v486_v62 = vpop.f32.mrb[9].mxu1 }
 0x266   :  { %351 = vst.msk [vmem:[%s759_s5 + $0x8] sm:$0xff] %vm349_vm3, %v321_v59  ;;  %356 = vst.msk [vmem:[%s759_s5 + $0x30] sm:$0xff] %vm349_vm3, %v346_v60 }
 0x267   :  { %361 = vsyncpa [#allocation3], 1 }

</bundles_post_ra>
